<compile_context>
chip_gen: v6e
topology: v6e:2x2x1
jax: 0.10.0
libtpu: 0.0.40
codegen_flags: <defaults>
</compile_context>

<pallas_src>
import functools

import jax
import jax.numpy as jnp
import numpy as np
from jax.experimental import pallas as pl
from jax.experimental.pallas import tpu as pltpu


# ---------------------------------------------------------------------------
# host-side constants
# ---------------------------------------------------------------------------
def tril_indices(dim):
    """Same ordering as torch.tril_indices(dim, dim): row-major lower tri."""
    rows, cols = [], []
    for i in range(dim):
        for j in range(i + 1):
            rows.append(i)
            cols.append(j)
    return np.array(rows, np.int32), np.array(cols, np.int32)


def build_quad_matrices(dim):
    """Constant 0/1 matrices (A, B, S) such that for a tril vector t (in
    torch.tril_indices order) the tril entries of L @ L^T are

        D_tril = ((t @ A) * (t @ B)) @ S

    Column c of A/B selects the two factors of one product term
    t[idx(i,k)] * t[idx(j,k)]; S scatter-adds the terms into output slot p."""
    rows, cols = tril_indices(dim)
    T = len(rows)
    pos = {(int(r), int(c)): p for p, (r, c) in enumerate(zip(rows, cols))}
    a_idx, b_idx, p_idx = [], [], []
    for p, (i, j) in enumerate(zip(rows, cols)):
        for k in range(int(j) + 1):
            a_idx.append(pos[(int(i), k)])
            b_idx.append(pos[(int(j), k)])
            p_idx.append(p)
    ncol = len(p_idx)
    A = np.zeros((T, ncol), np.float32)
    B = np.zeros((T, ncol), np.float32)
    S = np.zeros((ncol, T), np.float32)
    A[a_idx, np.arange(ncol)] = 1.0
    B[b_idx, np.arange(ncol)] = 1.0
    S[np.arange(ncol), p_idx] = 1.0
    return A, B, S


def _round_up(x, m):
    return ((x + m - 1) // m) * m


# ---------------------------------------------------------------------------
# Pallas kernel (natural layout: batch rows on sublanes, features on lanes)
# ---------------------------------------------------------------------------
def _lnn_diff_kernel(n_hidden, sub_cols, n_sub, x_ref, *refs):
    """refs = (W0, b0, ..., W_{n_hidden-1}, b_{n_hidden-1},
               WA, bA, WB, bB, Sdt, out_ref).

    x_ref:   (tile_cols, input_dim)           natural-layout block of x
    W_l:     (in_l, out_l), b_l: (1, out_l)   hidden layers (ELU after each)
    WA/WB:   (in_last, ncol)                  last Linear folded with A / B
    bA/bB:   (1, ncol)
    Sdt:     (ncol, T)                        0/1 scatter-add matrix * dt
    out_ref: (tile_cols, T)
    """
    w_refs = refs[:2 * n_hidden]
    wa_ref, ba_ref, wb_ref, bb_ref, s_ref = refs[2 * n_hidden:2 * n_hidden + 5]
    o_ref = refs[2 * n_hidden + 5]

    def body(c, carry):
        off = pl.multiple_of(c * sub_cols, sub_cols)
        h = x_ref[pl.ds(off, sub_cols), :]
        # Hidden MLP layers: h <- ELU(h @ W + b).
        for l in range(n_hidden):
            w = w_refs[2 * l][...]
            b = w_refs[2 * l + 1][...]
            h = jnp.dot(h, w, preferred_element_type=jnp.float32) + b
            # ELU(alpha=1); exp of the clamped value avoids inf on the
            # discarded positive branch.
            h = jnp.where(h > 0, h, jnp.exp(jnp.minimum(h, 0.0)) - 1.0)
        # Last Linear folded with the 0/1 gather matrices; quadratic form
        # (tril entries of L @ L^T, times dt) as (P * Q) @ Sdt.
        p = jnp.dot(h, wa_ref[...], preferred_element_type=jnp.float32) + ba_ref[...]
        q = jnp.dot(h, wb_ref[...], preferred_element_type=jnp.float32) + bb_ref[...]
        d = jnp.dot(p * q, s_ref[...], preferred_element_type=jnp.float32)
        o_ref[pl.ds(off, sub_cols), :] = d.astype(o_ref.dtype)
        return carry

    jax.lax.fori_loop(0, n_sub, body, None, unroll=True)


# ---------------------------------------------------------------------------
# wrappers
# ---------------------------------------------------------------------------
def lnn_diff_inhomogeneous(x, weights, biases, dim, dt, *,
                           tile_cols=2048, sub_cols=256):
    """forward() for diff_mode == 'inhomogeneous'.

    x:        (N, B, input_dim)
    weights:  list of (in, out) matrices   (i.e. torch Linear.weight.T)
    biases:   list of (out,) vectors
    returns:  (N, B, dim*(dim+1)//2)
    """
    assert len(weights) == len(biases) >= 1
    N, B, in_dim = x.shape
    NB = N * B
    T = dim * (dim + 1) // 2
    n_hidden = len(weights) - 1

    # --- tile selection (big N*B axis is the row/sublane axis) ---
    nb128 = _round_up(max(NB, 1), 128)
    sub = min(_round_up(int(sub_cols), 128), nb128)
    tile = max(sub, min(_round_up(int(tile_cols), sub), _round_up(nb128, sub)))
    g = -(-nb128 // tile)                       # number of grid steps
    if g == 1 and nb128 >= 2 * sub:
        g = 2                                   # keep both v7x TensorCores busy
    tile = _round_up(-(-NB // g), sub)          # even split, multiple of sub
    NB_pad = g * tile
    n_sub = tile // sub

    xf = x.reshape(NB, in_dim).astype(jnp.float32)
    if NB_pad != NB:
        xf = jnp.pad(xf, ((0, NB_pad - NB), (0, 0)))

    # --- fold last Linear layer and dt into small constant operands (exact:
    #     A/B are one-hot column selectors, Sdt is 0/1 times dt) ---
    A, Bm, S = build_quad_matrices(dim)
    W_last = jnp.asarray(weights[-1], jnp.float32)
    b_last = jnp.asarray(biases[-1], jnp.float32)
    WA = W_last @ jnp.asarray(A)                          # (in_last, ncol)
    WB = W_last @ jnp.asarray(Bm)
    bA = (b_last @ jnp.asarray(A)).reshape(1, -1)         # (1, ncol)
    bB = (b_last @ jnp.asarray(Bm)).reshape(1, -1)
    Sdt = jnp.asarray(S) * jnp.float32(dt)                # (ncol, T)

    args = [xf]
    in_specs = [pl.BlockSpec((tile, in_dim), lambda i: (i, 0))]
    for W, b in zip(weights[:-1], biases[:-1]):
        Wf = jnp.asarray(W, jnp.float32)
        bf = jnp.asarray(b, jnp.float32).reshape(1, -1)
        args += [Wf, bf]
        in_specs += [pl.BlockSpec(Wf.shape, lambda i: (0, 0)),
                     pl.BlockSpec(bf.shape, lambda i: (0, 0))]
    for cst in (WA, bA, WB, bB, Sdt):
        args.append(cst)
        in_specs.append(pl.BlockSpec(cst.shape, lambda i: (0, 0)))

    out = pl.pallas_call(
        functools.partial(_lnn_diff_kernel, n_hidden, sub, n_sub),
        out_shape=jax.ShapeDtypeStruct((NB_pad, T), jnp.float32),
        grid_spec=pltpu.PrefetchScalarGridSpec(
            num_scalar_prefetch=0,
            grid=(NB_pad // tile,),
            in_specs=in_specs,
            out_specs=pl.BlockSpec((tile, T), lambda i: (i, 0)),
        ),
        compiler_params=pltpu.CompilerParams(
            dimension_semantics=("parallel",)),
    )(*args)

    return out[:NB].reshape(N, B, T)


def lnn_diff_homogeneous(tril_param, dim, dt):
    """forward() for diff_mode == 'homogeneous'.  tril_param: (T,).

    Per the performance review this ~100-FLOP computation is done with plain
    XLA: a pallas_call's launch / DMA setup overhead dominates it by orders of
    magnitude.
    """
    rows, cols = tril_indices(dim)
    L = jnp.zeros((dim, dim), jnp.float32).at[rows, cols].set(
        tril_param.astype(jnp.float32))
    return (L @ L.T)[rows, cols] * dt


# ---------------------------------------------------------------------------
# pure-JAX references (mirror the PyTorch forward exactly)
# ---------------------------------------------------------------------------
def ref_inhomogeneous(x, weights, biases, dim, dt):
    rows, cols = tril_indices(dim)
    h = x
    for l, (W, b) in enumerate(zip(weights, biases)):
        h = h @ W + b
        if l != len(weights) - 1:
            h = jnp.where(h > 0, h, jnp.exp(h) - 1.0)
    N, B, _ = x.shape
    L = jnp.zeros((N, B, dim, dim), jnp.float32).at[:, :, rows, cols].set(h)
    D = jnp.einsum("nbik,nbjk->nbij", L, L)
    return D[:, :, rows, cols] * dt


def ref_homogeneous(tril_param, dim, dt):
    rows, cols = tril_indices(dim)
    L = jnp.zeros((dim, dim), jnp.float32).at[rows, cols].set(tril_param)
    return (L @ L.T)[rows, cols] * dt


# ---------------------------------------------------------------------------
if __name__ == "__main__":
    # small shapes consistent with the module (opt.dim=4, opt.input_dim=6,
    # opt.n_hidden=32, opt.n_layer=2, opt.time_step=0.01)
    N, B, input_dim, dim, n_hidden = 2, 8, 6, 4, 32
    dt = 0.01
    T = dim * (dim + 1) // 2  # = 10

    key = jax.random.PRNGKey(0)
    k1, k2, k3, k4, k5, k6, k7, k8, k9 = jax.random.split(key, 9)
    x = jax.random.normal(k1, (N, B, input_dim), jnp.float32)

    # deterministic synthetic parameters (weights stored as (in, out))
    W1 = 0.1 * jax.random.normal(k2, (input_dim, n_hidden), jnp.float32)
    b1 = 0.1 * jax.random.normal(k3, (n_hidden,), jnp.float32)
    W2 = 0.1 * jax.random.normal(k4, (n_hidden, T), jnp.float32)
    b2 = 0.1 * jax.random.normal(k5, (T,), jnp.float32)
    weights, biases = [W1, W2], [b1, b2]

    # --- inhomogeneous mode, n_layer=2 (main hot path) ---
    out = jax.block_until_ready(
        lnn_diff_inhomogeneous(x, weights, biases, dim, dt))
    ref = ref_inhomogeneous(x, weights, biases, dim, dt)
    assert out.shape == (N, B, T)
    np.testing.assert_allclose(np.asarray(out), np.asarray(ref),
                               rtol=1e-5, atol=1e-6)

    # --- larger case exercising a multi-step parallel grid, tail padding and
    #     the inner sub-chunk loop (NB=320 -> tile=256, grid=2, n_sub=2) ---
    x2 = jax.random.normal(k7, (4, 80, input_dim), jnp.float32)
    out2 = jax.block_until_ready(
        lnn_diff_inhomogeneous(x2, weights, biases, dim, dt,
                               tile_cols=256, sub_cols=128))
    ref2 = ref_inhomogeneous(x2, weights, biases, dim, dt)
    np.testing.assert_allclose(np.asarray(out2), np.asarray(ref2),
                               rtol=1e-5, atol=1e-6)

    # --- n_layer=1 variant (single Linear, no ELU) ---
    W_s = 0.1 * jax.random.normal(k8, (input_dim, T), jnp.float32)
    b_s = 0.1 * jax.random.normal(k9, (T,), jnp.float32)
    out3 = jax.block_until_ready(
        lnn_diff_inhomogeneous(x, [W_s], [b_s], dim, dt))
    ref3 = ref_inhomogeneous(x, [W_s], [b_s], dim, dt)
    np.testing.assert_allclose(np.asarray(out3), np.asarray(ref3),
                               rtol=1e-5, atol=1e-6)

    # --- homogeneous mode (plain XLA per perf review) ---
    tril_param = 0.2 * jax.random.normal(k6, (T,), jnp.float32)
    out_h = jax.block_until_ready(lnn_diff_homogeneous(tril_param, dim, dt))
    ref_h = ref_homogeneous(tril_param, dim, dt)
    np.testing.assert_allclose(np.asarray(out_h), np.asarray(ref_h),
                               rtol=1e-5, atol=1e-6)

    print("KERNEL_OK")
</pallas_src>

<mosaic_0001>
module attributes {stable_mosaic.version = 11 : i64} {
  func.func @_lnn_diff_kernel(%arg0: i32, %arg1: memref<128x6xf32, #tpu.memory_space<vmem>>, %arg2: memref<6x32xf32, #tpu.memory_space<vmem>>, %arg3: memref<1x32xf32, #tpu.memory_space<vmem>>, %arg4: memref<32x20xf32, #tpu.memory_space<vmem>>, %arg5: memref<1x20xf32, #tpu.memory_space<vmem>>, %arg6: memref<32x20xf32, #tpu.memory_space<vmem>>, %arg7: memref<1x20xf32, #tpu.memory_space<vmem>>, %arg8: memref<20x10xf32, #tpu.memory_space<vmem>>, %arg9: memref<128x10xf32, #tpu.memory_space<vmem>>) attributes {dimension_semantics = [#tpu.dimension_semantics<parallel>], iteration_bounds = array<i64: 1>, scalar_prefetch = 0 : i64, scratch_operands = 0 : i64, tpu.core_type = #tpu.core_type<tc>, window_params = [{transform_indices = @transform_0, window_bounds = array<i64: 128, 6>}, {pipeline_mode = #tpu.pipeline_mode<synchronous>, transform_indices = @transform_1, window_bounds = array<i64: 6, 32>}, {pipeline_mode = #tpu.pipeline_mode<synchronous>, transform_indices = @transform_2, window_bounds = array<i64: 1, 32>}, {pipeline_mode = #tpu.pipeline_mode<synchronous>, transform_indices = @transform_3, window_bounds = array<i64: 32, 20>}, {pipeline_mode = #tpu.pipeline_mode<synchronous>, transform_indices = @transform_4, window_bounds = array<i64: 1, 20>}, {pipeline_mode = #tpu.pipeline_mode<synchronous>, transform_indices = @transform_5, window_bounds = array<i64: 32, 20>}, {pipeline_mode = #tpu.pipeline_mode<synchronous>, transform_indices = @transform_6, window_bounds = array<i64: 1, 20>}, {pipeline_mode = #tpu.pipeline_mode<synchronous>, transform_indices = @transform_7, window_bounds = array<i64: 20, 10>}, {transform_indices = @transform_8, window_bounds = array<i64: 128, 10>}]} {
    %c0_i32 = arith.constant 0 : i32
    %c128_i32 = arith.constant 128 : i32
    %0 = arith.muli %c0_i32, %c128_i32 : i32
    %1 = tpu.assume_multiple %0, 128 : i32
    %2 = arith.index_cast %1 : i32 to index
    %c0 = arith.constant 0 : index
    %3 = vector.load %arg1[%2, %c0] : memref<128x6xf32, #tpu.memory_space<vmem>>, vector<128x6xf32>
    %c0_0 = arith.constant 0 : index
    %c0_1 = arith.constant 0 : index
    %4 = vector.load %arg2[%c0_0, %c0_1] : memref<6x32xf32, #tpu.memory_space<vmem>>, vector<6x32xf32>
    %c0_2 = arith.constant 0 : index
    %c0_3 = arith.constant 0 : index
    %5 = vector.load %arg3[%c0_2, %c0_3] : memref<1x32xf32, #tpu.memory_space<vmem>>, vector<1x32xf32>
    %cst = arith.constant dense<0.000000e+00> : vector<128x32xf32>
    %6 = tpu.matmul %3, %4, %cst {dimension_numbers = #tpu.dot_dimension_numbers<[1], [0], [0], [1], [0, 0, 1, 1], [], []>} : vector<128x6xf32>, vector<6x32xf32>, vector<128x32xf32> -> vector<128x32xf32>
    %7 = vector.broadcast %5 : vector<1x32xf32> to vector<128x32xf32>
    %8 = arith.addf %6, %7 : vector<128x32xf32>
    %cst_4 = arith.constant 0.000000e+00 : f32
    %9 = vector.broadcast %cst_4 : f32 to vector<128x32xf32>
    %10 = arith.cmpf ogt, %8, %9 : vector<128x32xf32>
    %cst_5 = arith.constant 0.000000e+00 : f32
    %11 = vector.broadcast %cst_5 : f32 to vector<128x32xf32>
    %12 = arith.minimumf %8, %11 : vector<128x32xf32>
    %13 = math.exp %12 : vector<128x32xf32>
    %cst_6 = arith.constant 1.000000e+00 : f32
    %14 = vector.broadcast %cst_6 : f32 to vector<128x32xf32>
    %15 = arith.subf %13, %14 : vector<128x32xf32>
    %16 = arith.select %10, %8, %15 : vector<128x32xi1>, vector<128x32xf32>
    %c0_7 = arith.constant 0 : index
    %c0_8 = arith.constant 0 : index
    %17 = vector.load %arg4[%c0_7, %c0_8] : memref<32x20xf32, #tpu.memory_space<vmem>>, vector<32x20xf32>
    %cst_9 = arith.constant dense<0.000000e+00> : vector<128x20xf32>
    %18 = tpu.matmul %16, %17, %cst_9 {dimension_numbers = #tpu.dot_dimension_numbers<[1], [0], [0], [1], [0, 0, 1, 1], [], []>} : vector<128x32xf32>, vector<32x20xf32>, vector<128x20xf32> -> vector<128x20xf32>
    %c0_10 = arith.constant 0 : index
    %c0_11 = arith.constant 0 : index
    %19 = vector.load %arg5[%c0_10, %c0_11] : memref<1x20xf32, #tpu.memory_space<vmem>>, vector<1x20xf32>
    %20 = vector.broadcast %19 : vector<1x20xf32> to vector<128x20xf32>
    %21 = arith.addf %18, %20 : vector<128x20xf32>
    %c0_12 = arith.constant 0 : index
    %c0_13 = arith.constant 0 : index
    %22 = vector.load %arg6[%c0_12, %c0_13] : memref<32x20xf32, #tpu.memory_space<vmem>>, vector<32x20xf32>
    %cst_14 = arith.constant dense<0.000000e+00> : vector<128x20xf32>
    %23 = tpu.matmul %16, %22, %cst_14 {dimension_numbers = #tpu.dot_dimension_numbers<[1], [0], [0], [1], [0, 0, 1, 1], [], []>} : vector<128x32xf32>, vector<32x20xf32>, vector<128x20xf32> -> vector<128x20xf32>
    %c0_15 = arith.constant 0 : index
    %c0_16 = arith.constant 0 : index
    %24 = vector.load %arg7[%c0_15, %c0_16] : memref<1x20xf32, #tpu.memory_space<vmem>>, vector<1x20xf32>
    %25 = vector.broadcast %24 : vector<1x20xf32> to vector<128x20xf32>
    %26 = arith.addf %23, %25 : vector<128x20xf32>
    %27 = arith.mulf %21, %26 : vector<128x20xf32>
    %c0_17 = arith.constant 0 : index
    %c0_18 = arith.constant 0 : index
    %28 = vector.load %arg8[%c0_17, %c0_18] : memref<20x10xf32, #tpu.memory_space<vmem>>, vector<20x10xf32>
    %cst_19 = arith.constant dense<0.000000e+00> : vector<128x10xf32>
    %29 = tpu.matmul %27, %28, %cst_19 {dimension_numbers = #tpu.dot_dimension_numbers<[1], [0], [0], [1], [0, 0, 1, 1], [], []>} : vector<128x20xf32>, vector<20x10xf32>, vector<128x10xf32> -> vector<128x10xf32>
    %30 = arith.index_cast %1 : i32 to index
    %c0_20 = arith.constant 0 : index
    %31 = vector.load %arg9[%30, %c0_20] : memref<128x10xf32, #tpu.memory_space<vmem>>, vector<128x10xf32>
    tpu.vector_store %arg9[%30, %c0_20], %29 {strides = array<i32>} : memref<128x10xf32, #tpu.memory_space<vmem>>, vector<128x10xf32>,
    %c1_i32 = arith.constant 1 : i32
    return
  }
  func.func @transform_0(%arg0: i32) -> (i32, i32) {
    %c0_i32 = arith.constant 0 : i32
    %c0_i32_0 = arith.constant 0 : i32
    return %arg0, %c0_i32 : i32, i32
  }
  func.func @transform_1(%arg0: i32) -> (i32, i32) {
    %c0_i32 = arith.constant 0 : i32
    %c0_i32_0 = arith.constant 0 : i32
    %c0_i32_1 = arith.constant 0 : i32
    return %c0_i32, %c0_i32_0 : i32, i32
  }
  func.func @transform_2(%arg0: i32) -> (i32, i32) {
    %c0_i32 = arith.constant 0 : i32
    %c0_i32_0 = arith.constant 0 : i32
    %c0_i32_1 = arith.constant 0 : i32
    return %c0_i32, %c0_i32_0 : i32, i32
  }
  func.func @transform_3(%arg0: i32) -> (i32, i32) {
    %c0_i32 = arith.constant 0 : i32
    %c0_i32_0 = arith.constant 0 : i32
    %c0_i32_1 = arith.constant 0 : i32
    return %c0_i32, %c0_i32_0 : i32, i32
  }
  func.func @transform_4(%arg0: i32) -> (i32, i32) {
    %c0_i32 = arith.constant 0 : i32
    %c0_i32_0 = arith.constant 0 : i32
    %c0_i32_1 = arith.constant 0 : i32
    return %c0_i32, %c0_i32_0 : i32, i32
  }
  func.func @transform_5(%arg0: i32) -> (i32, i32) {
    %c0_i32 = arith.constant 0 : i32
    %c0_i32_0 = arith.constant 0 : i32
    %c0_i32_1 = arith.constant 0 : i32
    return %c0_i32, %c0_i32_0 : i32, i32
  }
  func.func @transform_6(%arg0: i32) -> (i32, i32) {
    %c0_i32 = arith.constant 0 : i32
    %c0_i32_0 = arith.constant 0 : i32
    %c0_i32_1 = arith.constant 0 : i32
    return %c0_i32, %c0_i32_0 : i32, i32
  }
  func.func @transform_7(%arg0: i32) -> (i32, i32) {
    %c0_i32 = arith.constant 0 : i32
    %c0_i32_0 = arith.constant 0 : i32
    %c0_i32_1 = arith.constant 0 : i32
    return %c0_i32, %c0_i32_0 : i32, i32
  }
  func.func @transform_8(%arg0: i32) -> (i32, i32) {
    %c0_i32 = arith.constant 0 : i32
    %c0_i32_0 = arith.constant 0 : i32
    return %arg0, %c0_i32 : i32, i32
  }
}

</mosaic_0001>

<bundles_post_ra>
// kernel: tpu_custom_call.1
= control target key start
LH: loop header
LB: loop body
LE: loop exit
PB: predicated region body
PF: predicated region fallthrough
CT: control target
= control target key end

     0   :  { %vm102_vm0 = vcmask 1045504   ;;  %vm53_vm1 = vcmask 48128   ;;  %vm776_vm2 = vcmask 1043456   ;;  %vm358_vm3 = vcmask 261120   ;;  %s1665_s1 = inlined_call_operand.vmem [shape: f32[6,32], index: 1, kind: input, shape index: {}]   ;;  %s1666_s0 = inlined_call_operand.vmem [shape: f32[128,6], index: 0, kind: input, shape index: {}]   ;;  %s1667_s5 = inlined_call_operand.vmem [shape: f32[32,20], index: 5, kind: input, shape index: {}]   ;;  %s1668_s3 = inlined_call_operand.vmem [shape: f32[32,20], index: 3, kind: input, shape index: {}]   ;;  %s1669_s7 = inlined_call_operand.vmem [shape: f32[20,10], index: 7, kind: input, shape index: {}]   ;;  %s1670_s2 = inlined_call_operand.vmem [shape: f32[1,32], index: 2, kind: input, shape index: {}]   ;;  %s1671_s4 = inlined_call_operand.vmem [shape: f32[1,20], index: 4, kind: input, shape index: {}]   ;;  %s1672_s6 = inlined_call_operand.vmem [shape: f32[1,20], index: 6, kind: input, shape index: {}]   ;;  %s1673_s8 = inlined_call_operand.vmem [shape: f32[128,10], index: 8, kind: output, shape index: {}]  }
   0x1   :  { %v45_v0 = vld [vmem:[%s1665_s1] sm:$0x3f]  ;;  %v30_v2 = vld [vmem:[%s1666_s0 + $0x8] sm:$0xff]  ;;  %v31_v3 = vld [vmem:[%s1666_s0 + $0x10] sm:$0xff] }
   0x2   :  { %v29_v1 = vld [vmem:[%s1666_s0] sm:$0xff]  ;;  %1107 = vmatprep.subr.msk.mxu0 %vm102_vm0, %v45_v0  ;;  %v32_v4 = vld [vmem:[%s1666_s0 + $0x18] sm:$0xff]  ;;  %v34_v7 = vld [vmem:[%s1666_s0 + $0x28] sm:$0xff] }
   0x3   :  { %1109 = vmatprep.mubr.msk.f32.mxu0 %vm53_vm1, %v29_v1  ;;  %1108 = vmatpush3.msk.msra.mxu0 %vm102_vm0, %v45_v0  ;;  %v33_v5 = vld [vmem:[%s1666_s0 + $0x20] sm:$0xff]  ;;  %v555_v6 = vld [vmem:[%s1667_s5 + $0x18] sm:$0xff]  ;;  %v35_v8 = vld [vmem:[%s1666_s0 + $0x30] sm:$0xff] }
   0x4   :  { %1110 = vmatmul.mubr.msk.f32.vlgmr.msra.gmra.mxu0 %vm53_vm1, %v30_v2  ;;  %1165 = vmatprep.subr.mxu0 %v555_v6  ;;  %v36_v9 = vld [vmem:[%s1666_s0 + $0x38] sm:$0xff]  ;;  %v37_v10 = vld [vmem:[%s1666_s0 + $0x40] sm:$0xff]  ;;  %v38_v11 = vld [vmem:[%s1666_s0 + $0x48] sm:$0xff] }
   0x5   :  { %1112 = vmatprep.mubr.msk.f32.mxu0 %vm53_vm1, %v31_v3  ;;  %1166 = vmatpush3.msra.mxu0 %v555_v6  ;;  %v39_v12 = vld [vmem:[%s1666_s0 + $0x50] sm:$0xff]  ;;  %v40_v13 = vld [vmem:[%s1666_s0 + $0x58] sm:$0xff]  ;;  %v41_v14 = vld [vmem:[%s1666_s0 + $0x60] sm:$0xff] }
   0x6   :  { %v42_v15 = vld [vmem:[%s1666_s0 + $0x68] sm:$0xff]  ;;  %v43_v16 = vld [vmem:[%s1666_s0 + $0x70] sm:$0xff]  ;;  %v44_v17 = vld [vmem:[%s1666_s0 + $0x78] sm:$0xff] }
   0x7   :  { %v554_v18 = vld [vmem:[%s1667_s5 + $0x10] sm:$0xff]  ;;  %v553_v19 = vld [vmem:[%s1667_s5 + $0x8] sm:$0xff]  ;;  %v350_v20 = vld [vmem:[%s1668_s3 + $0x18] sm:$0xff] }
   0x8   :  { %1113 = vmatmul.mubr.msk.f32.gmra.mxu0 %vm53_vm1, %v32_v4  ;;  %1167 = vmatprep.subr.mxu0 %v554_v18  ;;  %v349_v21 = vld [vmem:[%s1668_s3 + $0x10] sm:$0xff]  ;;  %v348_v22 = vld [vmem:[%s1668_s3 + $0x8] sm:$0xff]  ;;  %v552_v23 = vld [vmem:[%s1667_s5] sm:$0xff] }
   0x9   :  { %1115 = vmatprep.mubr.msk.f32.mxu0 %vm53_vm1, %v33_v5  ;;  %1168 = vmatpush3.msra.mxu0 %v554_v18  ;;  %v347_v24 = vld [vmem:[%s1668_s3] sm:$0xff]  ;;  %v1398_v25 = vld [vmem:[%s1669_s7 + $0x10] sm:$0xf] }
   0xa   :  { %1169 = vmatprep.subr.mxu0 %v553_v19  ;;  %1133 = vmatprep.subr.mxu1 %v350_v20  ;;  %v1405_v26 = vld [vmem:[%s1670_s2] ss:$0 sm:$0xff] }
   0xb   :  { %1170 = vmatpush3.msra.mxu0 %v553_v19  ;;  %1134 = vmatpush3.msra.mxu1 %v350_v20 }
   0xc   :  { %1116 = vmatmul.mubr.msk.f32.gmra.mxu0 %vm53_vm1, %v34_v7  ;;  %1135 = vmatprep.subr.mxu1 %v349_v21 }
   0xd   :  { %1118 = vmatprep.mubr.msk.f32.mxu0 %vm53_vm1, %v35_v8  ;;  %1136 = vmatpush3.msra.mxu1 %v349_v21 }
   0xe   :  { %1137 = vmatprep.subr.mxu1 %v348_v22  ;;  %1171 = vmatprep.subr.mxu0 %v552_v23 }
   0xf   :  { %1138 = vmatpush3.msra.mxu1 %v348_v22  ;;  %1172 = vmatpush3.msra.mxu0 %v552_v23 }
  0x10   :  { %1119 = vmatmul.mubr.msk.f32.gmra.mxu0 %vm53_vm1, %v36_v9  ;;  %1139 = vmatprep.subr.mxu1 %v347_v24 }
  0x11   :  { %1121 = vmatprep.mubr.msk.f32.mxu0 %vm53_vm1, %v37_v10  ;;  %1140 = vmatpush3.msra.mxu1 %v347_v24  ;;  %v725_v24 = vld [vmem:[%s1669_s7 + $0x8] sm:$0xff] }
  0x12   :  { %1197 = vmatprep.subr.msk.mxu1 %vm776_vm2, %v1398_v25 }
  0x14   :  { %1122 = vmatmul.mubr.msk.f32.gmra.mxu0 %vm53_vm1, %v38_v11 }
  0x15   :  { %1124 = vmatprep.mubr.msk.f32.mxu0 %vm53_vm1, %v39_v12 }
  0x18   :  { %1125 = vmatmul.mubr.msk.f32.gmra.mxu0 %vm53_vm1, %v40_v13 }
  0x19   :  { %1127 = vmatprep.mubr.msk.f32.mxu0 %vm53_vm1, %v41_v14 }
  0x1c   :  { %1128 = vmatmul.mubr.msk.f32.gmra.mxu0 %vm53_vm1, %v42_v15 }
  0x1d   :  { %1130 = vmatprep.mubr.msk.f32.mxu0 %vm53_vm1, %v43_v16 }
  0x20   :  { %1131 = vmatmul.mubr.msk.f32.gmra.mxu0 %vm53_vm1, %v44_v17 }
  0xc4   :  { %v1111_v27 = vpop.f32.mrf.mxu0 }
  0xc5   :  { %v1408_v28 = vadd.f32 %v1111_v27, %v1405_v26 }
  0xc6   :  { %v172_v29 = vpop.f32.mrf.mxu0 }
  0xc7   :  { %v268_v30 = vmin.f32 %v1408_v28, 0.0  ;;  %v1412_v31 = vadd.f32 %v1405_v26, %v172_v29  ;;  %vm252_vm5 = vcmp.gt.f32.partialorder %v1408_v28, 0.0 }
  0xc8   :  { %v1114_v32 = vpop.f32.mrf.mxu0 }
  0xc9   :  { %v285_v33 = vmul.f32 1.442695, %v268_v30  ;;  %v267_v34 = vmin.f32 %v1412_v31, 0.0  ;;  %v1416_v35 = vadd.f32 %v1114_v32, %v1405_v26  ;;  %vm251_vm4 = vcmp.gt.f32.partialorder %v1412_v31, 0.0 }
  0xca   :  { %v182_v36 = vpop.f32.mrf.mxu0 }
  0xcb   :  { %1227 = vpow2.f32 %v285_v33  ;;  %v283_v37 = vmul.f32 1.442695, %v267_v34  ;;  %v270_v38 = vmin.f32 %v1416_v35, 0.0  ;;  %v1420_v39 = vadd.f32 %v1405_v26, %v182_v36 }
  0xcc   :  { %v1117_v40 = vpop.f32.mrf.mxu0  ;;  %vm254_vm6 = vcmp.gt.f32.partialorder %v1416_v35, 0.0 }
  0xcd   :  { %1229 = vpow2.f32 %v283_v37  ;;  %v289_v41 = vmul.f32 1.442695, %v270_v38  ;;  %v1423_v42 = vadd.f32 %v1117_v40, %v1405_v26  ;;  %v269_v43 = vmin.f32 %v1420_v39, 0.0 }
  0xce   :  { %v192_v44 = vpop.f32.mrf.mxu0  ;;  %vm253_vm7 = vcmp.gt.f32.partialorder %v1420_v39, 0.0 }
  0xcf   :  { %1231 = vpow2.f32 %v289_v41  ;;  %v272_v45 = vmin.f32 %v1423_v42, 0.0  ;;  %v1428_v46 = vadd.f32 %v1405_v26, %v192_v44  ;;  %v287_v47 = vmul.f32 1.442695, %v269_v43 }
  0xd0   :  { %v1120_v48 = vpop.f32.mrf.mxu0  ;;  %vm256_vm9 = vcmp.gt.f32.partialorder %v1423_v42, 0.0 }
  0xd1   :  { %v293_v49 = vmul.f32 1.442695, %v272_v45  ;;  %v271_v50 = vmin.f32 %v1428_v46, 0.0  ;;  %v1432_v51 = vadd.f32 %v1120_v48, %v1405_v26  ;;  %1233 = vpow2.f32 %v287_v47 }
  0xd2   :  { %v202_v52 = vpop.f32.mrf.mxu0  ;;  %vm255_vm8 = vcmp.gt.f32.partialorder %v1428_v46, 0.0 }
  0xd3   :  { %1235 = vpow2.f32 %v293_v49  ;;  %v291_v53 = vmul.f32 1.442695, %v271_v50  ;;  %v274_v54 = vmin.f32 %v1432_v51, 0.0  ;;  %v1436_v55 = vadd.f32 %v1405_v26, %v202_v52 }
  0xd4   :  { %v1123_v56 = vpop.f32.mrf.mxu0  ;;  %vm258_vm11 = vcmp.gt.f32.partialorder %v1432_v51, 0.0 }
  0xd5   :  { %1237 = vpow2.f32 %v291_v53  ;;  %v297_v57 = vmul.f32 1.442695, %v274_v54  ;;  %v1439_v58 = vadd.f32 %v1123_v56, %v1405_v26  ;;  %v273_v59 = vmin.f32 %v1436_v55, 0.0 }
  0xd6   :  { %v212_v60 = vpop.f32.mrf.mxu0  ;;  %vm257_vm10 = vcmp.gt.f32.partialorder %v1436_v55, 0.0 }
  0xd7   :  { %1239 = vpow2.f32 %v297_v57  ;;  %v276_v61 = vmin.f32 %v1439_v58, 0.0  ;;  %v1444_v62 = vadd.f32 %v1405_v26, %v212_v60  ;;  %v295_v0 = vmul.f32 1.442695, %v273_v59 }
  0xd8   :  { %v1228_v63 = vpop.eup %1227  ;;  %v1126_v1 = vpop.f32.mrf.mxu0  ;;  %vm260_vm13 = vcmp.gt.f32.partialorder %v1439_v58, 0.0 }
  0xd9   :  { %v301_v2 = vmul.f32 1.442695, %v276_v61  ;;  %v275_v3 = vmin.f32 %v1444_v62, 0.0  ;;  %v1448_v4 = vadd.f32 %v1126_v1, %v1405_v26  ;;  %1241 = vpow2.f32 %v295_v0 }
  0xda   :  { %v1230_v5 = vpop.eup %1229  ;;  %v222_v6 = vpop.f32.mrf.mxu0  ;;  %v965_v9 = vadd.f32 -1.0, %v1228_v63  ;;  %vm259_vm12 = vcmp.gt.f32.partialorder %v1444_v62, 0.0 }
  0xdb   :  { %1243 = vpow2.f32 %v301_v2  ;;  %v299_v7 = vmul.f32 1.442695, %v275_v3  ;;  %v278_v8 = vmin.f32 %v1448_v4, 0.0  ;;  %v1452_v11 = vadd.f32 %v1405_v26, %v222_v6 }
  0xdc   :  { %v1232_v10 = vpop.eup %1231  ;;  %v1129_v12 = vpop.f32.mrf.mxu0  ;;  %v964_v13 = vadd.f32 -1.0, %v1230_v5  ;;  %v332_v23 = vsel %vm252_vm5, %v1408_v28, %v965_v9  ;;  %vm262_vm15 = vcmp.gt.f32.partialorder %v1448_v4, 0.0  ;;  %vm925_vm5 = vcmask 80896  }
  0xdd   :  { %1245 = vpow2.f32 %v299_v7  ;;  %v305_v14 = vmul.f32 1.442695, %v278_v8  ;;  %v1455_v15 = vadd.f32 %v1129_v12, %v1405_v26  ;;  %v277_v16 = vmin.f32 %v1452_v11, 0.0 }
  0xde   :  { %v232_v17 = vpop.f32.mrf.mxu0  ;;  %v331_v18 = vsel %vm251_vm4, %v1412_v31, %v964_v13  ;;  %v967_v19 = vadd.f32 -1.0, %v1232_v10  ;;  %v1234_v20 = vpop.eup %1233  ;;  %vm261_vm14 = vcmp.gt.f32.partialorder %v1452_v11, 0.0  ;;  %v1546_v13 = vld [vmem:[%s1671_s4] ss:$0 sm:$0xff] }
  0xdf   :  { %1247 = vpow2.f32 %v305_v14  ;;  %v280_v21 = vmin.f32 %v1455_v15, 0.0  ;;  %v1463_v22 = vadd.f32 %v1405_v26, %v232_v17  ;;  %1141 = vmatprep.mubr.msk.f32.mxu1 %vm358_vm3, %v331_v18  ;;  %1173 = vmatprep.mubr.msk.f32.mxu0 %vm358_vm3, %v331_v18  ;;  %v303_v29 = vmul.f32 1.442695, %v277_v16  ;;  %v1551_v14 = vld [vmem:[%s1672_s6] ss:$0 sm:$0xff] }
  0xe0   :  { %v1236_v27 = vpop.eup %1235  ;;  %1142 = vmatmul.mubr.msk.f32.vlgmr.msra.gmra.mxu1 %vm358_vm3, %v332_v23  ;;  %1174 = vmatmul.mubr.msk.f32.vlgmr.msra.gmra.mxu0 %vm358_vm3, %v332_v23  ;;  %v1132_v30 = vpop.f32.mrf.mxu0  ;;  %v966_v31 = vadd.f32 -1.0, %v1234_v20  ;;  %v334_v38 = vsel %vm254_vm6, %v1416_v35, %v967_v19  ;;  %vm264_vm1 = vcmp.gt.f32.partialorder %v1455_v15, 0.0 }
  0xe1   :  { %v309_v32 = vmul.f32 1.442695, %v280_v21  ;;  %v279_v33 = vmin.f32 %v1463_v22, 0.0  ;;  %v1477_v28 = vadd.f32 %v1132_v30, %v1405_v26  ;;  %1198 = vmatpush3.msk.msra.mxu1 %vm776_vm2, %v1398_v25  ;;  %1249 = vpow2.f32 %v303_v29  ;;  %v724_v25 = vld [vmem:[%s1669_s7] sm:$0xff] }
  0xe2   :  { %v1238_v34 = vpop.eup %1237  ;;  %v242_v36 = vpop.f32.mrf.mxu0  ;;  %v333_v37 = vsel %vm253_vm7, %v1420_v39, %v966_v31  ;;  %1199 = vmatprep.subr.mxu1 %v725_v24  ;;  %v969_v43 = vadd.f32 -1.0, %v1236_v27  ;;  %vm263_vm0 = vcmp.gt.f32.partialorder %v1463_v22, 0.0 }
  0xe3   :  { %1251 = vpow2.f32 %v309_v32  ;;  %v307_v40 = vmul.f32 1.442695, %v279_v33  ;;  %v282_v41 = vmin.f32 %v1477_v28, 0.0  ;;  %1144 = vmatprep.mubr.msk.f32.mxu1 %vm358_vm3, %v333_v37  ;;  %1176 = vmatprep.mubr.msk.f32.mxu0 %vm358_vm3, %v333_v37  ;;  %v1490_v45 = vadd.f32 %v1405_v26, %v242_v36 }
  0xe4   :  { %v1240_v44 = vpop.eup %1239  ;;  %1145 = vmatmul.mubr.msk.f32.gmra.mxu1 %vm358_vm3, %v334_v38  ;;  %1177 = vmatmul.mubr.msk.f32.gmra.mxu0 %vm358_vm3, %v334_v38  ;;  %v968_v35 = vadd.f32 -1.0, %v1238_v34  ;;  %v336_v26 = vsel %vm256_vm9, %v1423_v42, %v969_v43  ;;  %vm266_vm4 = vcmp.gt.f32.partialorder %v1477_v28, 0.0 }
  0xe5   :  { %1253 = vpow2.f32 %v307_v40  ;;  %v313_v39 = vmul.f32 1.442695, %v282_v41  ;;  %1200 = vmatpush3.msra.mxu1 %v725_v24  ;;  %v281_v47 = vmin.f32 %v1490_v45, 0.0  ;;  %v971_v50 = vadd.f32 -1.0, %v1240_v44 }
  0xe6   :  { %v335_v48 = vsel %vm255_vm8, %v1428_v46, %v968_v35  ;;  %1201 = vmatprep.subr.mxu1 %v724_v25  ;;  %v1242_v49 = vpop.eup %1241  ;;  %vm265_vm2 = vcmp.gt.f32.partialorder %v1490_v45, 0.0 }
  0xe7   :  { %1255 = vpow2.f32 %v313_v39  ;;  %1147 = vmatprep.mubr.msk.f32.mxu1 %vm358_vm3, %v335_v48  ;;  %1179 = vmatprep.mubr.msk.f32.mxu0 %vm358_vm3, %v335_v48  ;;  %v311_v53 = vmul.f32 1.442695, %v281_v47  ;;  %v970_v54 = vadd.f32 -1.0, %v1242_v49  ;;  %v338_v42 = vsel %vm258_vm11, %v1432_v51, %v971_v50 }
  0xe8   :  { %v1244_v52 = vpop.eup %1243  ;;  %1148 = vmatmul.mubr.msk.f32.gmra.mxu1 %vm358_vm3, %v336_v26  ;;  %1180 = vmatmul.mubr.msk.f32.gmra.mxu0 %vm358_vm3, %v336_v26 }
  0xe9   :  { %1202 = vmatpush3.msra.mxu1 %v724_v25  ;;  %1257 = vpow2.f32 %v311_v53  ;;  %v337_v56 = vsel %vm257_vm10, %v1436_v55, %v970_v54  ;;  %v973_v59 = vadd.f32 -1.0, %v1244_v52 }
  0xea   :  { %v1246_v46 = vpop.eup %1245  ;;  %1150 = vmatprep.mubr.msk.f32.mxu1 %vm358_vm3, %v337_v56  ;;  %1182 = vmatprep.mubr.msk.f32.mxu0 %vm358_vm3, %v337_v56 }
  0xeb   :  { %v972_v57 = vadd.f32 -1.0, %v1246_v46  ;;  %v340_v51 = vsel %vm260_vm13, %v1439_v58, %v973_v59 }
  0xec   :  { %v1248_v60 = vpop.eup %1247  ;;  %1151 = vmatmul.mubr.msk.f32.gmra.mxu1 %vm358_vm3, %v338_v42  ;;  %1183 = vmatmul.mubr.msk.f32.gmra.mxu0 %vm358_vm3, %v338_v42 }
  0xed   :  { %v339_v61 = vsel %vm259_vm12, %v1444_v62, %v972_v57  ;;  %v975_v63 = vadd.f32 -1.0, %v1248_v60 }
  0xee   :  { %1153 = vmatprep.mubr.msk.f32.mxu1 %vm358_vm3, %v339_v61  ;;  %1185 = vmatprep.mubr.msk.f32.mxu0 %vm358_vm3, %v339_v61  ;;  %v1250_v55 = vpop.eup %1249 }
  0xef   :  { %v974_v1 = vadd.f32 -1.0, %v1250_v55  ;;  %v342_v58 = vsel %vm262_vm15, %v1448_v4, %v975_v63 }
  0xf0   :  { %v1252_v0 = vpop.eup %1251  ;;  %1154 = vmatmul.mubr.msk.f32.gmra.mxu1 %vm358_vm3, %v340_v51  ;;  %1186 = vmatmul.mubr.msk.f32.gmra.mxu0 %vm358_vm3, %v340_v51 }
  0xf1   :  { %v341_v62 = vsel %vm261_vm14, %v1452_v11, %v974_v1  ;;  %v977_v5 = vadd.f32 -1.0, %v1252_v0 }
  0xf2   :  { %v1254_v2 = vpop.eup %1253  ;;  %1156 = vmatprep.mubr.msk.f32.mxu1 %vm358_vm3, %v341_v62  ;;  %1188 = vmatprep.mubr.msk.f32.mxu0 %vm358_vm3, %v341_v62 }
  0xf3   :  { %v976_v3 = vadd.f32 -1.0, %v1254_v2  ;;  %v344_v4 = vsel %vm264_vm1, %v1455_v15, %v977_v5 }
  0xf4   :  { %v1256_v6 = vpop.eup %1255  ;;  %1157 = vmatmul.mubr.msk.f32.gmra.mxu1 %vm358_vm3, %v342_v58  ;;  %1189 = vmatmul.mubr.msk.f32.gmra.mxu0 %vm358_vm3, %v342_v58 }
  0xf5   :  { %v343_v7 = vsel %vm263_vm0, %v1463_v22, %v976_v3  ;;  %v979_v9 = vadd.f32 -1.0, %v1256_v6 }
  0xf6   :  { %1159 = vmatprep.mubr.msk.f32.mxu1 %vm358_vm3, %v343_v7  ;;  %1191 = vmatprep.mubr.msk.f32.mxu0 %vm358_vm3, %v343_v7  ;;  %v1258_v8 = vpop.eup %1257 }
  0xf7   :  { %v978_v10 = vadd.f32 -1.0, %v1258_v8  ;;  %v346_v12 = vsel %vm266_vm4, %v1477_v28, %v979_v9 }
  0xf8   :  { %1160 = vmatmul.mubr.msk.f32.gmra.mxu1 %vm358_vm3, %v344_v4  ;;  %1192 = vmatmul.mubr.msk.f32.gmra.mxu0 %vm358_vm3, %v344_v4 }
  0xf9   :  { %v345_v11 = vsel %vm265_vm2, %v1490_v45, %v978_v10 }
  0xfa   :  { %1162 = vmatprep.mubr.msk.f32.mxu1 %vm358_vm3, %v345_v11  ;;  %1194 = vmatprep.mubr.msk.f32.mxu0 %vm358_vm3, %v345_v11 }
  0xfc   :  { %1163 = vmatmul.mubr.msk.f32.gmra.mxu1 %vm358_vm3, %v346_v12  ;;  %1195 = vmatmul.mubr.msk.f32.gmra.mxu0 %vm358_vm3, %v346_v12  ;;  %vm727_vm3 = vcmask 162816  }
 0x1a0   :  { %v1143_v15 = vpop.f32.mrf.mxu1  ;;  %v1175_v16 = vpop.f32.mrf.mxu0 }
 0x1a1   :  { %v479_v17 = vadd.f32 %v1143_v15, %v1546_v13  ;;  %v635_v18 = vadd.f32 %v1175_v16, %v1551_v14 }
 0x1a2   :  { %v473_v19 = vpop.f32.mrf.mxu1  ;;  %v629_v20 = vpop.f32.mrf.mxu0 }
 0x1a3   :  { %v474_v21 = vadd.f32 %v1546_v13, %v473_v19  ;;  %v630_v22 = vadd.f32 %v1551_v14, %v629_v20  ;;  %v709_v29 = vmul.f32 %v635_v18, %v479_v17 }
 0x1a4   :  { %v1146_v23 = vpop.f32.mrf.mxu1  ;;  %v1178_v24 = vpop.f32.mrf.mxu0 }
 0x1a5   :  { %v708_v27 = vmul.f32 %v630_v22, %v474_v21  ;;  %v489_v30 = vadd.f32 %v1146_v23, %v1546_v13  ;;  %v645_v31 = vadd.f32 %v1178_v24, %v1551_v14 }
 0x1a6   :  { %v483_v32 = vpop.f32.mrf.mxu1  ;;  %v639_v33 = vpop.f32.mrf.mxu0 }
 0x1a7   :  { %v484_v28 = vadd.f32 %v1546_v13, %v483_v32  ;;  %v640_v34 = vadd.f32 %v1551_v14, %v639_v33  ;;  %1203 = vmatprep.mubr.msk.f32.mxu1 %vm727_vm3, %v708_v27  ;;  %v711_v40 = vmul.f32 %v645_v31, %v489_v30 }
 0x1a8   :  { %v1149_v36 = vpop.f32.mrf.mxu1  ;;  %v1181_v37 = vpop.f32.mrf.mxu0  ;;  %1204 = vmatmul.mubr.msk.f32.vlgmr.msra.gmra.mxu1 %vm727_vm3, %v709_v29 }
 0x1a9   :  { %v710_v38 = vmul.f32 %v640_v34, %v484_v28  ;;  %v499_v41 = vadd.f32 %v1149_v36, %v1546_v13  ;;  %v655_v43 = vadd.f32 %v1181_v37, %v1551_v14 }
 0x1aa   :  { %v493_v25 = vpop.f32.mrf.mxu1  ;;  %v649_v44 = vpop.f32.mrf.mxu0 }
 0x1ab   :  { %v494_v45 = vadd.f32 %v1546_v13, %v493_v25  ;;  %v650_v35 = vadd.f32 %v1551_v14, %v649_v44  ;;  %1206 = vmatprep.mubr.msk.f32.mxu1 %vm727_vm3, %v710_v38  ;;  %v713_v49 = vmul.f32 %v655_v43, %v499_v41 }
 0x1ac   :  { %v1152_v39 = vpop.f32.mrf.mxu1  ;;  %v1184_v47 = vpop.f32.mrf.mxu0  ;;  %1207 = vmatmul.mubr.msk.f32.gmra.mxu1 %vm727_vm3, %v711_v40 }
 0x1ad   :  { %v712_v48 = vmul.f32 %v650_v35, %v494_v45  ;;  %v509_v26 = vadd.f32 %v1152_v39, %v1546_v13  ;;  %v665_v50 = vadd.f32 %v1184_v47, %v1551_v14 }
 0x1ae   :  { %v503_v52 = vpop.f32.mrf.mxu1  ;;  %v659_v53 = vpop.f32.mrf.mxu0 }
 0x1af   :  { %v504_v54 = vadd.f32 %v1546_v13, %v503_v52  ;;  %v660_v46 = vadd.f32 %v1551_v14, %v659_v53  ;;  %1209 = vmatprep.mubr.msk.f32.mxu1 %vm727_vm3, %v712_v48  ;;  %v715_v59 = vmul.f32 %v665_v50, %v509_v26 }
 0x1b0   :  { %v1155_v56 = vpop.f32.mrf.mxu1  ;;  %v1187_v42 = vpop.f32.mrf.mxu0  ;;  %1210 = vmatmul.mubr.msk.f32.gmra.mxu1 %vm727_vm3, %v713_v49 }
 0x1b1   :  { %v714_v57 = vmul.f32 %v660_v46, %v504_v54  ;;  %v519_v60 = vadd.f32 %v1155_v56, %v1546_v13  ;;  %v675_v61 = vadd.f32 %v1187_v42, %v1551_v14 }
 0x1b2   :  { %v513_v55 = vpop.f32.mrf.mxu1  ;;  %v669_v51 = vpop.f32.mrf.mxu0 }
 0x1b3   :  { %v514_v63 = vadd.f32 %v1546_v13, %v513_v55  ;;  %v670_v0 = vadd.f32 %v1551_v14, %v669_v51  ;;  %1212 = vmatprep.mubr.msk.f32.mxu1 %vm727_vm3, %v714_v57  ;;  %v717_v58 = vmul.f32 %v675_v61, %v519_v60 }
 0x1b4   :  { %v1158_v1 = vpop.f32.mrf.mxu1  ;;  %v1190_v2 = vpop.f32.mrf.mxu0  ;;  %1213 = vmatmul.mubr.msk.f32.gmra.mxu1 %vm727_vm3, %v715_v59 }
 0x1b5   :  { %v716_v62 = vmul.f32 %v670_v0, %v514_v63  ;;  %v529_v3 = vadd.f32 %v1158_v1, %v1546_v13  ;;  %v685_v5 = vadd.f32 %v1190_v2, %v1551_v14 }
 0x1b6   :  { %v523_v6 = vpop.f32.mrf.mxu1  ;;  %v679_v7 = vpop.f32.mrf.mxu0 }
 0x1b7   :  { %v524_v8 = vadd.f32 %v1546_v13, %v523_v6  ;;  %v680_v4 = vadd.f32 %v1551_v14, %v679_v7  ;;  %1215 = vmatprep.mubr.msk.f32.mxu1 %vm727_vm3, %v716_v62  ;;  %v719_v12 = vmul.f32 %v685_v5, %v529_v3 }
 0x1b8   :  { %v1161_v9 = vpop.f32.mrf.mxu1  ;;  %v1193_v10 = vpop.f32.mrf.mxu0  ;;  %1216 = vmatmul.mubr.msk.f32.gmra.mxu1 %vm727_vm3, %v717_v58 }
 0x1b9   :  { %v718_v11 = vmul.f32 %v680_v4, %v524_v8  ;;  %v539_v15 = vadd.f32 %v1161_v9, %v1546_v13  ;;  %v695_v16 = vadd.f32 %v1193_v10, %v1551_v14 }
 0x1ba   :  { %v533_v17 = vpop.f32.mrf.mxu1  ;;  %v689_v18 = vpop.f32.mrf.mxu0 }
 0x1bb   :  { %v534_v19 = vadd.f32 %v1546_v13, %v533_v17  ;;  %v690_v20 = vadd.f32 %v1551_v14, %v689_v18  ;;  %1218 = vmatprep.mubr.msk.f32.mxu1 %vm727_vm3, %v718_v11  ;;  %v721_v24 = vmul.f32 %v695_v16, %v539_v15 }
 0x1bc   :  { %v1164_v21 = vpop.f32.mrf.mxu1  ;;  %v1196_v22 = vpop.f32.mrf.mxu0  ;;  %1219 = vmatmul.mubr.msk.f32.gmra.mxu1 %vm727_vm3, %v719_v12 }
 0x1bd   :  { %v720_v23 = vmul.f32 %v690_v20, %v534_v19  ;;  %v549_v27 = vadd.f32 %v1164_v21, %v1546_v13  ;;  %v705_v29 = vadd.f32 %v1196_v22, %v1551_v14 }
 0x1be   :  { %v543_v30 = vpop.f32.mrf.mxu1  ;;  %v699_v31 = vpop.f32.mrf.mxu0 }
 0x1bf   :  { %v544_v32 = vadd.f32 %v1546_v13, %v543_v30  ;;  %v700_v33 = vadd.f32 %v1551_v14, %v699_v31  ;;  %1221 = vmatprep.mubr.msk.f32.mxu1 %vm727_vm3, %v720_v23  ;;  %v723_v34 = vmul.f32 %v705_v29, %v549_v27 }
 0x1c0   :  { %1222 = vmatmul.mubr.msk.f32.gmra.mxu1 %vm727_vm3, %v721_v24 }
 0x1c1   :  { %v722_v28 = vmul.f32 %v700_v33, %v544_v32 }
 0x1c3   :  { %1224 = vmatprep.mubr.msk.f32.mxu1 %vm727_vm3, %v722_v28 }
 0x1c4   :  { %1225 = vmatmul.mubr.msk.f32.gmra.mxu1 %vm727_vm3, %v723_v34 }
 0x268   :  { %v1205_v36 = vpop.f32.mrf.mxu1 }
 0x269   :  { %927 = vst.msk [vmem:[%s1673_s8 + $0x8] sm:$0xff] %vm925_vm5, %v1205_v36 }
 0x26a   :  { %v846_v13 = vpop.f32.mrf.mxu1 }
 0x26b   :  { %926 = vst.msk [vmem:[%s1673_s8] sm:$0xff] %vm925_vm5, %v846_v13 }
 0x26c   :  { %v1208_v14 = vpop.f32.mrf.mxu1 }
 0x26d   :  { %929 = vst.msk [vmem:[%s1673_s8 + $0x18] sm:$0xff] %vm925_vm5, %v1208_v14 }
 0x26e   :  { %v856_v37 = vpop.f32.mrf.mxu1 }
 0x26f   :  { %928 = vst.msk [vmem:[%s1673_s8 + $0x10] sm:$0xff] %vm925_vm5, %v856_v37 }
 0x270   :  { %v1211_v38 = vpop.f32.mrf.mxu1 }
 0x271   :  { %931 = vst.msk [vmem:[%s1673_s8 + $0x28] sm:$0xff] %vm925_vm5, %v1211_v38 }
 0x272   :  { %v866_v40 = vpop.f32.mrf.mxu1 }
 0x273   :  { %930 = vst.msk [vmem:[%s1673_s8 + $0x20] sm:$0xff] %vm925_vm5, %v866_v40 }
 0x274   :  { %v1214_v41 = vpop.f32.mrf.mxu1 }
 0x275   :  { %933 = vst.msk [vmem:[%s1673_s8 + $0x38] sm:$0xff] %vm925_vm5, %v1214_v41 }
 0x276   :  { %v876_v43 = vpop.f32.mrf.mxu1 }
 0x277   :  { %932 = vst.msk [vmem:[%s1673_s8 + $0x30] sm:$0xff] %vm925_vm5, %v876_v43 }
 0x278   :  { %v1217_v25 = vpop.f32.mrf.mxu1 }
 0x279   :  { %935 = vst.msk [vmem:[%s1673_s8 + $0x48] sm:$0xff] %vm925_vm5, %v1217_v25 }
 0x27a   :  { %v886_v44 = vpop.f32.mrf.mxu1 }
 0x27b   :  { %934 = vst.msk [vmem:[%s1673_s8 + $0x40] sm:$0xff] %vm925_vm5, %v886_v44 }
 0x27c   :  { %v1220_v45 = vpop.f32.mrf.mxu1 }
 0x27d   :  { %937 = vst.msk [vmem:[%s1673_s8 + $0x58] sm:$0xff] %vm925_vm5, %v1220_v45 }
 0x27e   :  { %v896_v35 = vpop.f32.mrf.mxu1 }
 0x27f   :  { %936 = vst.msk [vmem:[%s1673_s8 + $0x50] sm:$0xff] %vm925_vm5, %v896_v35 }
 0x280   :  { %v1223_v39 = vpop.f32.mrf.mxu1 }
 0x281   :  { %939 = vst.msk [vmem:[%s1673_s8 + $0x68] sm:$0xff] %vm925_vm5, %v1223_v39 }
 0x282   :  { %v906_v47 = vpop.f32.mrf.mxu1 }
 0x283   :  { %938 = vst.msk [vmem:[%s1673_s8 + $0x60] sm:$0xff] %vm925_vm5, %v906_v47 }
 0x284   :  { %v1226_v48 = vpop.f32.mrf.mxu1 }
 0x285   :  { %941 = vst.msk [vmem:[%s1673_s8 + $0x78] sm:$0xff] %vm925_vm5, %v1226_v48 }
 0x286   :  { %v916_v49 = vpop.f32.mrf.mxu1 }
 0x287   :  { %940 = vst.msk [vmem:[%s1673_s8 + $0x70] sm:$0xff] %vm925_vm5, %v916_v49 }

</bundles_post_ra>
